<compile_context>
chip_gen: v6e
topology: v6e:2x2x1
jax: 0.10.0
libtpu: 0.0.40
codegen_flags: <defaults>
</compile_context>

<pallas_src>
import jax
import jax.numpy as jnp
from jax.experimental import pallas as pl
from jax.experimental.pallas import tpu as pltpu

_MIB = 1024 * 1024
# Below this total size we use a single block (pipeline / megacore overhead
# outweighs any read/write overlap for tiny tensors).
_SINGLE_BLOCK_MAX_BYTES = 512 * 1024


def _relu_kernel(x_ref, o_ref):
    # Elementwise max(x, 0) on the whole VMEM tile (VPU op).
    o_ref[...] = jnp.maximum(x_ref[...], jnp.zeros((), x_ref.dtype))


def _sublane_multiple(itemsize: int) -> int:
    # Native packed tile: (8,128) for 4-byte, (16,128) for bf16, (32,128) for int8/fp8.
    return {4: 8, 2: 16, 1: 32}[itemsize]


def _chip_target_block_bytes() -> int:
    """Per-buffer VMEM block target, chip-dependent.

    v7x HBM (~3.2 TB/s per TC) makes the per-grid-step overhead visible at
    2 MiB blocks, so use ~4 MiB there; v5e/v6e stay at 2 MiB (v5e's 16 MiB
    scoped-VMEM default would be stressed by 4 buffers x 4 MiB and its slower
    HBM already hides the per-step overhead at 2 MiB).
    """
    try:
        kind = jax.devices()[0].device_kind.lower()
    except Exception:  # no devices / unusual backend: conservative default
        kind = ""
    if "v7" in kind:
        return 4 * _MIB
    return 2 * _MIB


def _pick_lane_width(n: int, sub: int):
    """Largest lane-dense width (multiple of 128, capped at 2048) dividing n.

    Prefers widths whose row count is a multiple of the dtype sublane multiple
    (no masked sublane stores / wasted tail step), tie-breaking toward larger
    widths; falls back to any dividing width; None if n % 128 != 0.
    """
    candidates = (2048, 1024, 512, 256, 128)
    for w in candidates:                    # tail-free factorization first
        if n % w == 0 and (n // w) % sub == 0:
            return w
    for w in candidates:                    # then any lane-dense width
        if n % w == 0:
            return w
    return None


def relu_pallas(x: jax.Array, *, alias_output_to_input: bool = False) -> jax.Array:
    """aten.relu.default: elementwise max(x, 0), same shape/dtype as input.

    alias_output_to_input: reuse the input HBM buffer for the output
    (input_output_aliases={0: 0}).  Only enable when the caller donates x
    (e.g. under jit with donate_argnums); in eager mode a non-donated aliased
    operand makes XLA insert a defensive copy, which would cost a full HBM
    pass.
    """
    n = x.size
    if n == 0:
        return x

    itemsize = jnp.dtype(x.dtype).itemsize
    if itemsize not in (1, 2, 4):
        # int64 / float64 etc.: no native TPU tile -> fused XLA elementwise op.
        return jnp.maximum(x, jnp.zeros((), x.dtype))

    sub = _sublane_multiple(itemsize)
    w = _pick_lane_width(n, sub)
    if w is None:
        # Ragged size (not a multiple of 128): stay copy-free and defer to the
        # fused XLA elementwise op rather than paying an extra HBM pad pass.
        # TODO(synk): run Pallas on the 128-aligned prefix and XLA on the tail.
        return jnp.maximum(x, jnp.zeros((), x.dtype))

    rows = n // w
    total_bytes = n * itemsize
    target_block_bytes = _chip_target_block_bytes()

    if total_bytes <= _SINGLE_BLOCK_MAX_BYTES:
        # Tiny tensor: one block, no pipelining needed.
        br = rows
        grid = (1,)
    else:
        # Enough blocks to (a) hit the per-buffer byte target, (b) keep >= 4
        # grid steps so input and output DMAs overlap (full-duplex HBM), and
        # (c) keep the count even so both v7x TensorCores get balanced work
        # on the "parallel" grid axis.
        g = max(pl.cdiv(total_bytes, target_block_bytes), 4)
        g += g % 2
        br = ((pl.cdiv(rows, g) + sub - 1) // sub) * sub   # sublane-aligned
        br = max(sub, min(br, rows))
        grid = (pl.cdiv(rows, br),)

    block_bytes = br * w * itemsize
    # 2 double-buffered arrays (input + output) -> 4 live block buffers;
    # add generous headroom for compiler-internal scratch.  32 MiB covers the
    # 4 MiB-block v7x case and is well inside every chip's physical VMEM.
    vmem_limit = min(max(4 * block_bytes + 16 * _MIB, 32 * _MIB), 48 * _MIB)

    x2d = jnp.reshape(x, (rows, w))    # contiguous -> copy-free view

    out2d = pl.pallas_call(
        _relu_kernel,
        out_shape=jax.ShapeDtypeStruct((rows, w), x.dtype),
        grid_spec=pltpu.PrefetchScalarGridSpec(
            num_scalar_prefetch=0,
            grid=grid,
            in_specs=[pl.BlockSpec((br, w), lambda i: (i, 0))],
            out_specs=pl.BlockSpec((br, w), lambda i: (i, 0)),
        ),
        compiler_params=pltpu.CompilerParams(
            dimension_semantics=("parallel",),
            vmem_limit_bytes=vmem_limit,
        ),
        cost_estimate=pl.CostEstimate(
            flops=n, transcendentals=0, bytes_accessed=2 * total_bytes),
        input_output_aliases=({0: 0} if alias_output_to_input else {}),
    )(x2d)

    return jnp.reshape(out2d, x.shape)


if __name__ == "__main__":
    key = jax.random.PRNGKey(0)

    # Primary test: small NCHW input consistent with a typical aten.relu call.
    x = jax.random.normal(key, (2, 4, 16, 16), dtype=jnp.float32)
    y = relu_pallas(x)
    jax.block_until_ready(y)
    assert y.shape == x.shape and y.dtype == x.dtype
    assert jnp.allclose(y, jnp.maximum(x, 0.0)), "ReLU mismatch (f32)"

    # bf16 path exercises the 16-sublane packed tile sizing (picks a (16,128) view).
    xb = x.astype(jnp.bfloat16)
    yb = relu_pallas(xb)
    jax.block_until_ready(yb)
    assert yb.dtype == jnp.bfloat16
    assert jnp.array_equal(yb, jnp.maximum(xb, jnp.zeros((), jnp.bfloat16))), \
        "ReLU mismatch (bf16)"

    # Larger input exercises the multi-block (>=4, even) pipelined grid with a
    # tail-free width choice (w=256 -> rows=4104, a multiple of 8).
    x_big = jax.random.normal(jax.random.PRNGKey(0), (1, 513, 32, 64),
                              dtype=jnp.float32)
    y_big = relu_pallas(x_big)
    jax.block_until_ready(y_big)
    assert jnp.allclose(y_big, jnp.maximum(x_big, 0.0)), "ReLU mismatch (tiled)"

    print("KERNEL_OK")
</pallas_src>

<mosaic_0001>
module attributes {stable_mosaic.version = 11 : i64} {
  func.func @_relu_kernel(%arg0: i32, %arg1: memref<8x256xf32, #tpu.memory_space<vmem>>, %arg2: memref<8x256xf32, #tpu.memory_space<vmem>>) attributes {dimension_semantics = [#tpu.dimension_semantics<parallel>], iteration_bounds = array<i64: 1>, scalar_prefetch = 0 : i64, scratch_operands = 0 : i64, tpu.core_type = #tpu.core_type<tc>, window_params = [{transform_indices = @transform_0, window_bounds = array<i64: 8, 256>}, {transform_indices = @transform_1, window_bounds = array<i64: 8, 256>}]} {
    %c0 = arith.constant 0 : index
    %c0_0 = arith.constant 0 : index
    %0 = vector.load %arg1[%c0, %c0_0] : memref<8x256xf32, #tpu.memory_space<vmem>>, vector<8x256xf32>
    %cst = arith.constant 0.000000e+00 : f32
    %1 = vector.broadcast %cst : f32 to vector<8x256xf32>
    %2 = arith.maximumf %0, %1 : vector<8x256xf32>
    %c0_1 = arith.constant 0 : index
    %c0_2 = arith.constant 0 : index
    %3 = vector.load %arg2[%c0_1, %c0_2] : memref<8x256xf32, #tpu.memory_space<vmem>>, vector<8x256xf32>
    tpu.vector_store %arg2[%c0_1, %c0_2], %2 {strides = array<i32>} : memref<8x256xf32, #tpu.memory_space<vmem>>, vector<8x256xf32>,
    return
  }
  func.func @transform_0(%arg0: i32) -> (i32, i32) {
    %c0_i32 = arith.constant 0 : i32
    %c0_i32_0 = arith.constant 0 : i32
    return %arg0, %c0_i32 : i32, i32
  }
  func.func @transform_1(%arg0: i32) -> (i32, i32) {
    %c0_i32 = arith.constant 0 : i32
    %c0_i32_0 = arith.constant 0 : i32
    return %arg0, %c0_i32 : i32, i32
  }
}

</mosaic_0001>

<bundles_post_ra>
// kernel: tpu_custom_call.1
= control target key start
LH: loop header
LB: loop body
LE: loop exit
PB: predicated region body
PF: predicated region fallthrough
CT: control target
= control target key end

     0   :  { %6 = vsyncpa [#allocation3], 0  ;;  %s106_s0 = inlined_call_operand.hbm [shape: f32[8,256], index: 0, kind: input, shape index: {}]   ;;  %s107_s1 = inlined_call_operand.hbm [shape: f32[8,256], index: 1, kind: output, shape index: {}]  }
   0x1   :  { %7 = vsyncpa [#allocation4], 0  ;;  %s88_s6 = smov [#allocation2]  }
   0x2   :  { %s14_s7 = sshll.u32 %s88_s6, 4  ;;  %s15_s7 = int_to_ptr.vmem [resolvable:$true] %s14_s7 }
   0x3   :  { %s52_s8 = scalar_lea.vmem %s15_s7, 256  ;;  %p57_p1 = scmp.lt.s32.totalorder %s15_s7, %s15_s7 }
   0x4   :  { %p53_p0 = scmp.ne.s32.totalorder %s15_s7, %s52_s8  ;;  %p58_p2 = scmp.lt.s32.totalorder %s52_s8, %s52_s8 }
   0x6   :  { %p59_p3 = por %p58_p2, %p57_p1 }
   0x8   :  { %p60_p4 = pnand %p59_p3, %p53_p0 }
   0xa   :  { %63 = shalt.err (!%p60_p4)
}
   0xb   :  { %17 = dma.hbm_to_vmem [thread:$0]  %s106_s0, 256, %s15_s7, [#allocation3]  }
   0xc   :  { %84 = dma.done.wait [#allocation3], 256  }
   0xd   :  { %85 = vsyncadd [#allocation3], 4294967040  ;;  %s89_s11 = smov [#allocation5]   ;;  %v21_v0 = vld [vmem:[#allocation2] sm:$0xff]  ;;  %v22_v1 = vld [vmem:[#allocation2 + $0x8] sm:$0xff] }
   0xe   :  { %s33_s12 = sshll.u32 %s89_s11, 4  ;;  %v23_v2 = vmax.f32 %v21_v0, 0.0  ;;  %v24_v3 = vmax.f32 %v22_v1, 0.0  ;;  %s34_s12 = int_to_ptr.vmem [resolvable:$true] %s33_s12 }
   0xf   :  { %s64_s13 = scalar_lea.vmem %s34_s12, 256  ;;  %p69_p6 = scmp.lt.s32.totalorder %s34_s12, %s34_s12 }
  0x10   :  { %25 = vst [vmem:[#allocation5] sm:$0xff] %v23_v2  ;;  %26 = vst [vmem:[#allocation5 + $0x8] sm:$0xff] %v24_v3  ;;  %p65_p5 = scmp.ne.s32.totalorder %s34_s12, %s64_s13  ;;  %p70_p7 = scmp.lt.s32.totalorder %s64_s13, %s64_s13 }
  0x12   :  { %p71_p8 = por %p70_p7, %p69_p6 }
  0x14   :  { %p72_p9 = pnand %p71_p8, %p65_p5 }
  0x16   :  { %75 = shalt.err (!%p72_p9)
}
  0x17   :  { %36 = dma.vmem_to_hbm [thread:$0]  %s34_s12, 256, %s107_s1, [#allocation4]  }
  0x18   :  { %86 = dma.done.wait [#allocation4], 256  }
  0x19   :  { %87 = vsyncadd [#allocation4], 4294967040 }
  0x1a   :  { %40 = vsyncpa [#allocation3], 1 }
  0x1b   :  { %41 = vsyncpa [#allocation4], 1 }

</bundles_post_ra>
